<compile_context>
chip_gen: v6e
topology: v6e:2x2x1
jax: 0.10.0
libtpu: 0.0.40
codegen_flags: <defaults>
</compile_context>

<pallas_src>
import jax
import jax.numpy as jnp
import numpy as np
from jax.experimental import pallas as pl
from jax.experimental.pallas import tpu as pltpu


def _new_attention_kernel(params_ref, x_ref, o_ref, acc_ref):
    """Grid = (batch_tiles, feature_tiles); feature (reduction) axis last.

    params_ref : SMEM (2,) f32    -> [w/D, b]  (weight-norm scale folded with 1/D)
    x_ref      : VMEM (TB, S, TD) -> input tile
    o_ref      : VMEM (TB, S)     -> softmax output tile
    acc_ref    : VMEM (TB, S) f32 -> partial row sums over the feature axis
    """
    d_idx = pl.program_id(1)

    @pl.when(d_idx == 0)
    def _init():
        acc_ref[...] = jnp.zeros_like(acc_ref)

    # f32-accumulated reduction over the feature tile (no full f32 copy of the tile).
    acc_ref[...] += jnp.sum(x_ref[...], axis=-1, dtype=jnp.float32)

    @pl.when(d_idx == pl.num_programs(1) - 1)
    def _finalize():
        w_over_d = params_ref[0]
        b = params_ref[1]
        logits = acc_ref[...] * w_over_d + b                      # (TB, S)
        # numerically-stable softmax over the sequence axis (PyTorch dim=1)
        logits = logits - jnp.max(logits, axis=-1, keepdims=True)
        e = jnp.exp(logits)
        denom = jnp.sum(e, axis=-1, keepdims=True)
        # EUP approximate reciprocal: effectively free (EUP is otherwise idle here).
        o_ref[...] = (e * pl.reciprocal(denom, approx=True)).astype(o_ref.dtype)


def _pick_tiles(B, S, D, itemsize, budget_bytes=4 << 20):
    """Choose (TB, TD) so one input tile stays under `budget_bytes`.

    TB: full B when B <= 8 (block equals the array dim, always legal); otherwise a
        multiple of 8 (sublane-dense output stores), chosen so the batch grid has
        >= 2 steps (keeps both v7x TensorCores busy).
    TD: full D if it fits; otherwise the largest multiple of 128 that divides D and
        fits (divisibility avoids masking partial sums of padded feature tiles).
    """
    if B <= 8:
        tb = B
    else:
        tb = 8
        for cand in (32, 24, 16):
            if cand <= B // 2 and cand * S * D * itemsize <= budget_bytes:
                tb = cand
                break

    if tb * S * D * itemsize <= budget_bytes:
        td = D
    else:
        td = None
        t = 128
        while t <= D:
            if D % t == 0 and tb * S * t * itemsize <= budget_bytes:
                td = t
            t += 128
        if td is None:
            td = D  # no clean 128-multiple divisor: fall back to full D
    return tb, td


def new_attention_forward(inp, weight_v, weight_g, bias):
    """Forward pass of NewAttention.

    inp      : (B, S, D)
    weight_v : (1, 1) f32  -- weight_norm 'v'
    weight_g : ()     f32  -- weight_norm 'g' (dim=None -> scalar)
    bias     : (1,)   f32
    returns  : (B, S, 1), matching the PyTorch output shape
    """
    B, S, D = inp.shape

    # weight_norm with dim=None: w = g * v / ||v||_F (a scalar here).  Fold the 1/D of
    # the mean into it so the kernel only needs a row *sum*.  Plain-JAX glue.
    w = weight_g * weight_v / jnp.sqrt(jnp.sum(weight_v * weight_v))
    params = jnp.stack(
        [w.reshape(()) / D, bias.reshape(())]
    ).astype(jnp.float32)                                          # (2,) = [w/D, b]

    itemsize = jnp.dtype(inp.dtype).itemsize
    tb, td = _pick_tiles(B, S, D, itemsize)
    grid = (pl.cdiv(B, tb), pl.cdiv(D, td))

    # Scoped-VMEM request: double-buffered in/out tiles + f32 scratch + slack.
    vmem_bytes = 2 * tb * S * td * itemsize + 2 * tb * S * itemsize + tb * S * 4
    vmem_limit = int(min(max(vmem_bytes + (2 << 20), 16 << 20), 64 << 20))

    out2d = pl.pallas_call(
        _new_attention_kernel,
        out_shape=jax.ShapeDtypeStruct((B, S), inp.dtype),
        grid=grid,
        in_specs=[
            pl.BlockSpec(memory_space=pltpu.SMEM),                 # params (scalars)
            pl.BlockSpec((tb, S, td), lambda i, d: (i, 0, d)),     # input tile
        ],
        out_specs=pl.BlockSpec((tb, S), lambda i, d: (i, 0)),
        scratch_shapes=[pltpu.VMEM((tb, S), jnp.float32)],
        compiler_params=pltpu.CompilerParams(
            dimension_semantics=("parallel", "arbitrary"),
            vmem_limit_bytes=vmem_limit,
        ),
    )(params, inp)

    return out2d[..., None]                                        # (B, S, 1)


def _reference_forward(inp, weight_v, weight_g, bias):
    """Pure-JAX reference for correctness checking."""
    w = weight_g * weight_v / jnp.sqrt(jnp.sum(weight_v * weight_v))  # (1,1)
    m = jnp.mean(inp, axis=2, keepdims=True)                          # (B, S, 1)
    logits = m * w[0, 0] + bias[0]                                    # (B, S, 1)
    return jax.nn.softmax(logits, axis=1)


if __name__ == "__main__":
    key = jax.random.PRNGKey(0)
    k_x, k_v = jax.random.split(key)

    # Deterministic parameter init (mirrors Linear(1,1) + weight_norm(dim=None)).
    weight_v = jax.random.normal(k_v, (1, 1), dtype=jnp.float32) * 0.5
    weight_g = jnp.sqrt(jnp.sum(weight_v * weight_v))   # weight_norm init: g = ||v||
    bias = jnp.array([0.1], dtype=jnp.float32)

    # Small spec-consistent shape, plus two shapes exercising the batch-tiled
    # (TB=8, 2-step parallel grid) and feature-streamed (D tiled, partial last
    # batch tile) code paths.
    shapes = [(2, 8, 32), (16, 128, 256), (10, 128, 2048)]
    for idx, (B, S, D) in enumerate(shapes):
        inp = jax.random.normal(jax.random.fold_in(k_x, idx), (B, S, D),
                                dtype=jnp.float32)
        out = jax.block_until_ready(new_attention_forward(inp, weight_v, weight_g, bias))
        ref = _reference_forward(inp, weight_v, weight_g, bias)
        assert out.shape == (B, S, 1), out.shape
        # Tolerance covers the EUP approximate reciprocal used for softmax normalization.
        np.testing.assert_allclose(np.asarray(out), np.asarray(ref),
                                    rtol=5e-3, atol=1e-4)

    print("KERNEL_OK")
</pallas_src>

<mosaic_0001>
module attributes {stable_mosaic.version = 11 : i64} {
  func.func @_new_attention_kernel(%arg0: i32, %arg1: i32, %arg2: memref<2xf32, #tpu.memory_space<smem>>, %arg3: memref<2x8x32xf32, #tpu.memory_space<vmem>>, %arg4: memref<2x8xf32, #tpu.memory_space<vmem>>, %arg5: memref<2x8xf32, #tpu.memory_space<vmem>>) attributes {dimension_semantics = [#tpu.dimension_semantics<parallel>, #tpu.dimension_semantics<arbitrary>], iteration_bounds = array<i64: 1, 1>, scalar_prefetch = 0 : i64, scratch_operands = 1 : i64, tpu.core_type = #tpu.core_type<tc>, window_params = [{transform_indices = @transform_0, window_bounds = array<i64: 2>}, {transform_indices = @transform_1, window_bounds = array<i64: 2, 8, 32>}, {transform_indices = @transform_2, window_bounds = array<i64: 2, 8>}]} {
    %c0_i32 = arith.constant 0 : i32
    %0 = arith.cmpi eq, %arg1, %c0_i32 : i32
    %1 = arith.extui %0 : i1 to i32
    %c0_i32_0 = arith.constant 0 : i32
    %2 = arith.cmpi ne, %1, %c0_i32_0 : i32
    scf.if %2 {
      %cst_9 = arith.constant 0.000000e+00 : f32
      %11 = vector.broadcast %cst_9 : f32 to vector<2x8xf32>
      %c0_10 = arith.constant 0 : index
      %c0_11 = arith.constant 0 : index
      %12 = vector.load %arg5[%c0_10, %c0_11] : memref<2x8xf32, #tpu.memory_space<vmem>>, vector<2x8xf32>
      tpu.vector_store %arg5[%c0_10, %c0_11], %11 {strides = array<i32>} : memref<2x8xf32, #tpu.memory_space<vmem>>, vector<2x8xf32>,
    } else {
    }
    %c0 = arith.constant 0 : index
    %c0_1 = arith.constant 0 : index
    %3 = vector.load %arg5[%c0, %c0_1] : memref<2x8xf32, #tpu.memory_space<vmem>>, vector<2x8xf32>
    %c0_2 = arith.constant 0 : index
    %c0_3 = arith.constant 0 : index
    %c0_4 = arith.constant 0 : index
    %4 = vector.load %arg3[%c0_2, %c0_3, %c0_4] : memref<2x8x32xf32, #tpu.memory_space<vmem>>, vector<2x8x32xf32>
    %cst = arith.constant dense<0.000000e+00> : vector<2x8xf32>
    %5 = vector.multi_reduction <add>, %4, %cst [2] : vector<2x8x32xf32> to vector<2x8xf32>
    %6 = arith.addf %3, %5 : vector<2x8xf32>
    %c0_5 = arith.constant 0 : index
    %c0_6 = arith.constant 0 : index
    %7 = vector.load %arg5[%c0_5, %c0_6] : memref<2x8xf32, #tpu.memory_space<vmem>>, vector<2x8xf32>
    tpu.vector_store %arg5[%c0_5, %c0_6], %6 {strides = array<i32>} : memref<2x8xf32, #tpu.memory_space<vmem>>, vector<2x8xf32>,
    %c0_i32_7 = arith.constant 0 : i32
    %8 = arith.cmpi eq, %arg1, %c0_i32_7 : i32
    %9 = arith.extui %8 : i1 to i32
    %c0_i32_8 = arith.constant 0 : i32
    %10 = arith.cmpi ne, %9, %c0_i32_8 : i32
    scf.if %10 {
      %c0_9 = arith.constant 0 : index
      %11 = memref.load %arg2[%c0_9] : memref<2xf32, #tpu.memory_space<smem>>
      %c1 = arith.constant 1 : index
      %12 = memref.load %arg2[%c1] : memref<2xf32, #tpu.memory_space<smem>>
      %c0_10 = arith.constant 0 : index
      %c0_11 = arith.constant 0 : index
      %13 = vector.load %arg5[%c0_10, %c0_11] : memref<2x8xf32, #tpu.memory_space<vmem>>, vector<2x8xf32>
      %14 = vector.broadcast %11 : f32 to vector<2x8xf32>
      %15 = arith.mulf %13, %14 : vector<2x8xf32>
      %16 = vector.broadcast %12 : f32 to vector<2x8xf32>
      %17 = arith.addf %15, %16 : vector<2x8xf32>
      %cst_12 = arith.constant dense<0xFF800000> : vector<2xf32>
      %18 = vector.multi_reduction <maximumf>, %17, %cst_12 [1] : vector<2x8xf32> to vector<2xf32>
      %19 = vector.shape_cast %18 : vector<2xf32> to vector<2x1xf32>
      %20 = vector.broadcast %19 : vector<2x1xf32> to vector<2x8xf32>
      %21 = arith.subf %17, %20 : vector<2x8xf32>
      %22 = math.exp %21 : vector<2x8xf32>
      %cst_13 = arith.constant dense<0.000000e+00> : vector<2xf32>
      %23 = vector.multi_reduction <add>, %22, %cst_13 [1] : vector<2x8xf32> to vector<2xf32>
      %24 = vector.shape_cast %23 : vector<2xf32> to vector<2x1xf32>
      %25 = tpu.reciprocal %24 {approx = true} : vector<2x1xf32> -> vector<2x1xf32>
      %26 = vector.broadcast %25 : vector<2x1xf32> to vector<2x8xf32>
      %27 = arith.mulf %22, %26 : vector<2x8xf32>
      %c0_14 = arith.constant 0 : index
      %c0_15 = arith.constant 0 : index
      %28 = vector.load %arg4[%c0_14, %c0_15] : memref<2x8xf32, #tpu.memory_space<vmem>>, vector<2x8xf32>
      tpu.vector_store %arg4[%c0_14, %c0_15], %27 {strides = array<i32>} : memref<2x8xf32, #tpu.memory_space<vmem>>, vector<2x8xf32>,
    } else {
    }
    return
  }
  func.func @transform_0(%arg0: i32, %arg1: i32) -> i32 {
    %c0_i32 = arith.constant 0 : i32
    %c0_i32_0 = arith.constant 0 : i32
    return %c0_i32 : i32
  }
  func.func @transform_1(%arg0: i32, %arg1: i32) -> (i32, i32, i32) {
    %c0_i32 = arith.constant 0 : i32
    %c0_i32_0 = arith.constant 0 : i32
    return %arg0, %c0_i32, %arg1 : i32, i32, i32
  }
  func.func @transform_2(%arg0: i32, %arg1: i32) -> (i32, i32) {
    %c0_i32 = arith.constant 0 : i32
    %c0_i32_0 = arith.constant 0 : i32
    return %arg0, %c0_i32 : i32, i32
  }
}

</mosaic_0001>

<bundles_post_ra>
// kernel: tpu_custom_call.1
= control target key start
LH: loop header
LB: loop body
LE: loop exit
PB: predicated region body
PF: predicated region fallthrough
CT: control target
= control target key end

     0   :  { %7 = vsyncpa [#allocation6], 0  ;;  %s209_s0 = inlined_call_operand.hbm [shape: f32[2], index: 0, kind: input, shape index: {}]   ;;  %s210_s1 = inlined_call_operand.hbm [shape: f32[2,8,32], index: 1, kind: input, shape index: {}]   ;;  %s211_s2 = inlined_call_operand.hbm [shape: f32[2,8], index: 2, kind: output, shape index: {}]  }
   0x1   :  { %8 = vsyncpa [#allocation4], 0 }
   0x2   :  { %9 = vsyncpa [#allocation5], 0  ;;  %s174_s9 = smov [#allocation3]   ;;  %s175_s12 = smov [#allocation7]  }
   0x3   :  { %17 = dma.hbm_to_smem %s209_s0, 16, %s174_s9, [#allocation6]  }
   0x4   :  { %s23_s13 = sshll.u32 %s175_s12, 4  ;;  %s24_s13 = int_to_ptr.vmem [resolvable:$true] %s23_s13 }
   0x5   :  { %s136_s14 = scalar_lea.vmem %s24_s13, 256  ;;  %p141_p1 = scmp.lt.s32.totalorder %s24_s13, %s24_s13 }
   0x6   :  { %p137_p0 = scmp.ne.s32.totalorder %s24_s13, %s136_s14  ;;  %p142_p2 = scmp.lt.s32.totalorder %s136_s14, %s136_s14 }
   0x8   :  { %p143_p3 = por %p142_p2, %p141_p1 }
   0xa   :  { %p144_p4 = pnand %p143_p3, %p137_p0 }
   0xc   :  { %147 = shalt.err (!%p144_p4)
}
   0xd   :  { %s176_s15 = smov 128   ;;  %s177_s16 = smov 8  }
   0xe   :  { %29 = dma.hbm_to_vmem [thread:$0]  %s210_s1, 256, %s24_s13, [#allocation4], %s176_s15, %s176_s15, %s177_s16  }
   0xf   :  { %168 = dma.done.wait [#allocation6], 16  }
  0x10   :  { %169 = vsyncadd [#allocation6], 4294967280 }
  0x11   :  { %170 = dma.done.wait [#allocation4], 256  }
  0x12   :  { %171 = vsyncadd [#allocation4], 4294967040 }
  0x13   :  { %36 = sfence }
  0x14   :  { %v44_v0 = vld [vmem:[#allocation7] sm:$0xff]  ;;  %vm46_vm0 = vcmask 261120   ;;  %v45_v1 = vld [vmem:[#allocation7 + $0x8] sm:$0xff]  ;;  %vm41_vm1 = vcmask 58368   ;;  %v178_v4 = vmov 0.0   ;;  %v55_v5 = vlaneseq  ;;  %s74_s0 = sld [smem:[#allocation3]] }
  0x15   :  { %v47_v2 = vsel %vm46_vm0, %v44_v0, 0.0  ;;  %v50_v3 = vsel %vm46_vm0, %v45_v1, 0.0  ;;  %42 = vst.msk [vmem:[#allocation2] sm:$0x3] %vm41_vm1, %v178_v4  ;;  %vm65_vm2 = vcmask 1041409   ;;  %s109_s1 = sld [smem:[#allocation3 + $0x1]] }
  0x16   :  { %48 = vadd.xlane.f32.xlu0 %v47_v2  ;;  %v56_v6 = vand.u32 127, %v55_v5  ;;  %v58_v7 = vshrl.u32 %v55_v5, 7  ;;  %s179_s19 = smov [#allocation8]  }
  0x17   :  { %s99_s20 = sshll.u32 %s179_s19, 4  ;;  %s100_s20 = int_to_ptr.vmem [resolvable:$true] %s99_s20 }
  0x18   :  { %v59_v9 = vsub.s32 %v56_v6, %v58_v7  ;;  %s148_s21 = scalar_lea.vmem %s100_s20, 32  ;;  %p153_p6 = scmp.lt.s32.totalorder %s100_s20, %s100_s20 }
  0x19   :  { %p149_p5 = scmp.ne.s32.totalorder %s100_s20, %s148_s21  ;;  %p154_p7 = scmp.lt.s32.totalorder %s148_s21, %s148_s21 }
  0x1a   :  { %51 = vadd.xlane.f32.xlu0 %v50_v3  ;;  %v77_v16 = vstv %s74_s0 }
  0x1b   :  { %v79_v18 = vstv %s109_s1  ;;  %p155_p8 = por %p154_p7, %p153_p6 }
  0x1c   :  { %v43_v12 = vld [vmem:[#allocation2] sm:$0x3] }
  0x1d   :  { %p156_p9 = pnand %p155_p8, %p149_p5 }
  0x9f   :  { %v49_v8 = vpop.xlane.xlu0 %48 }
  0xa0   :  { %v60_v11 = vrot.slane %v49_v8, %v59_v9 }
  0xa3   :  { %v52_v10 = vpop.xlane.xlu0 %51 }
  0xa4   :  { %v64_v13 = vrot.slane %v52_v10, %v59_v9 }
  0xa6   :  { %v66_v14 = vsel %vm65_vm2, %v64_v13, %v60_v11 }
  0xa7   :  { %v68_v15 = vadd.f32 %v66_v14, %v43_v12 }
  0xa9   :  { %70 = vst.msk [vmem:[#allocation2] sm:$0x3] %vm41_vm1, %v68_v15 }
  0xb0   :  { %v76_v17 = vld [vmem:[#allocation2] sm:$0x3] }
  0xb1   :  { %v78_v19 = vmul.f32 %v77_v16, %v76_v17 }
  0xb3   :  { %v80_v20 = vadd.f32 %v79_v18, %v78_v19 }
  0xb5   :  { %v81_v21 = vsel %vm41_vm1, %v80_v20, -inf }
  0xb6   :  { %82 = vmax.xlane.f32.xlu1 %v81_v21 }
 0x13f   :  { %v83_v22 = vpop.xlane.xlu1 %82 }
 0x140   :  { %v84_v23 = vsub.f32 %v80_v20, %v83_v22 }
 0x142   :  { %v85_v24 = vmul.f32 1.442695, %v84_v23 }
 0x144   :  { %116 = vpow2.f32 %v85_v24 }
 0x151   :  { %v117_v25 = vpop.eup %116 }
 0x152   :  { %v87_v26 = vsel %vm41_vm1, %v117_v25, 0.0 }
 0x153   :  { %88 = vadd.xlane.f32.xlu1 %v87_v26 }
 0x1dc   :  { %v89_v27 = vpop.xlane.xlu1 %88 }
 0x1dd   :  { %118 = vrcp.f32 %v89_v27 }
 0x1ea   :  { %v119_v28 = vpop.eup %118 }
 0x1eb   :  { %v91_v29 = vmul.f32 %v119_v28, %v117_v25 }
 0x1ed   :  { %92 = vst.msk [vmem:[#allocation8] sm:$0x3] %vm41_vm1, %v91_v29 }
 0x1ee   :  { %159 = shalt.err (!%p156_p9)
}
 0x1ef   :  { %102 = dma.vmem_to_hbm [thread:$0]  %s100_s20, 32, %s211_s2, [#allocation5]  }
 0x1f0   :  { %172 = dma.done.wait [#allocation5], 32  }
 0x1f1   :  { %173 = vsyncadd [#allocation5], 4294967264 }
 0x1f2   :  { %106 = vsyncpa [#allocation4], 1 }
 0x1f3   :  { %107 = vsyncpa [#allocation5], 1 }
 0x1f4   :  { %108 = vsyncpa [#allocation6], 1 }

</bundles_post_ra>
